<compile_context>
chip_gen: v7x
topology: tpu7x:2x2x1
jax: 0.10.0
libtpu: 0.0.40
codegen_flags: <defaults>
</compile_context>

<pallas_src>
import functools

import jax
import jax.numpy as jnp
from jax import lax
from jax.experimental import pallas as pl
from jax.experimental.pallas import tpu as pltpu


# ----------------------------- configuration -------------------------------
INPUT_DIM = 12                        # 9 (so3 flat) + 3 (r3)
HIDDEN_DIM = 32
NUM_HIDDEN_LAYERS = 2
VOXEL_OUT = 16                        # voxel_output_size
VOXEL_RES = 16                        # small stand-in for the 48^3 SDF grid
BATCH = 2
FEAT_DIM = INPUT_DIM + VOXEL_OUT + 1  # 29 = input_proj fan-in
MISC_DIM = 14                         # so3(9) + r3(3) + ns(1) + t(1)


def _silu(x):
    return x * jax.nn.sigmoid(x)


# ------------------------------ fused kernel --------------------------------
def _velocity_fused_kernel(
    sdf_ref,      # [B, tk]        bf16 (V tile)
    wsdf_ref,     # [VOXEL_OUT, tk] bf16 (V tile; V on lanes -> no lane padding)
    misc_ref,     # [B, 14]        f32: [so3(9) | r3(3) | ns(1) | t(1)]
    wslab_ref,    # [32, H]        f32: [win_sdf(16) | win_misc(13) | wt | bt | bin]
    wh_ref,       # [L, H+1, H]    f32  (row H of each layer = bias)
    wf_ref,       # [H+1, 12]      f32  (row H = bias; cols 0..8 skew-folded)
    out_ref,      # [B, 12]        f32  output: [R@S flat (9) | r3 velocity (3)]
    acc_ref,      # [B, VOXEL_OUT] f32  scratch: SDF-contraction accumulator
    *,
    num_hidden_layers,
    hidden_dim,
    voxel_out,
):
    f32 = jnp.float32
    k = pl.program_id(0)

    @pl.when(k == 0)
    def _init():
        acc_ref[...] = jnp.zeros_like(acc_ref)

    # ---- partial SDF contraction on this V tile: [B,tk] x [VO,tk] -> [B,VO] -
    acc_ref[...] += lax.dot_general(
        sdf_ref[...],
        wsdf_ref[...],
        dimension_numbers=(((1,), (1,)), ((), ())),
        preferred_element_type=f32,
    )

    # ---- everything else runs once, on the last K step ----------------------
    @pl.when(k == pl.num_programs(0) - 1)
    def _finish():
        H = hidden_dim
        VO = voxel_out

        sdf_feat = acc_ref[...]                         # [B, VO] (b_sdf folded into bin)
        misc = misc_ref[...]                            # [B, 14]
        wslab = wslab_ref[...]                          # [32, H]

        win_sdf = wslab[0:VO, :]                        # [VO, H]
        win_misc = wslab[VO:VO + 13, :]                 # [13, H]
        wt = wslab[VO + 13:VO + 14, :]                  # [1, H]
        bt = wslab[VO + 14:VO + 15, :]                  # [1, H]
        bin_ = wslab[VO + 15:VO + 16, :]                # [1, H] (b_sdf@win_sdf folded in)

        # time_proj: K=1 matmul -> VPU broadcast multiply
        t = misc[:, 13:14]                              # [B, 1]
        t_emb = _silu(t * wt + bt)                      # [B, H]

        # input_proj (split weights; the concatenated x never exists)
        h = (
            jnp.dot(sdf_feat, win_sdf, preferred_element_type=f32)
            + jnp.dot(misc[:, 0:13], win_misc, preferred_element_type=f32)
            + bin_
            + t_emb
        )

        # hidden_layers = [act, (Linear, act) * L], statically unrolled
        h = _silu(h)
        for l in range(num_hidden_layers):
            w_full = wh_ref[l]                          # [H+1, H]
            h = _silu(jnp.dot(h, w_full[:H, :], preferred_element_type=f32)
                      + w_full[H:H + 1, :])

        # final projection (skew fold baked into wf): v[:, 3k+j] == S[k, j]
        wf_full = wf_ref[...]                           # [H+1, 12]
        v = jnp.dot(h, wf_full[:H, :], preferred_element_type=f32) + wf_full[H:H + 1, :]

        # epilogue: out[:, 3i+j] = sum_{kk != j} R[i,kk] * S[kk,j]  (S[j,j]==0)
        r = [misc[:, c:c + 1] for c in range(9)]        # R[i,kk] = r[3i+kk]
        s = [v[:, c:c + 1] for c in range(9)]           # S[kk,j] = s[3kk+j]
        cols = []
        for i in range(3):
            for j in range(3):
                acc = None
                for kk in range(3):
                    if kk == j:
                        continue
                    term = r[3 * i + kk] * s[3 * kk + j]
                    acc = term if acc is None else acc + term
                cols.append(acc)
        out_ref[...] = jnp.concatenate(cols + [v[:, 9:12]], axis=-1)   # [B, 12]


# ------------------------------ wrappers -------------------------------------
def velocity_mlp_fused(params, sdf_flat_bf16, misc):
    B = misc.shape[0]
    V = sdf_flat_bf16.shape[1]
    H, L = HIDDEN_DIM, NUM_HIDDEN_LAYERS

    # K tile along V: multiple of 128 dividing V, capped so double-buffered
    # tiles stay tiny relative to every chip's scoped VMEM limit.
    tk = V
    for cand in (2048, 1024, 512, 256, 128):
        if V % cand == 0:
            tk = cand
            break
    num_k = V // tk

    kernel = functools.partial(
        _velocity_fused_kernel,
        num_hidden_layers=L,
        hidden_dim=H,
        voxel_out=VOXEL_OUT,
    )

    operands = (
        sdf_flat_bf16,
        params["w_sdf"],
        misc,
        params["w_in_slab"],
        params["wh_aug"],
        params["wf_aug"],
    )

    flops = (2 * B * (V * VOXEL_OUT + FEAT_DIM * H + L * H * H + H * INPUT_DIM)
             + 4 * B * 9)
    transcendentals = B * H * (2 + L)          # sigmoid exps
    bytes_accessed = (sum(int(x.size) * x.dtype.itemsize for x in operands)
                      + B * INPUT_DIM * 4)

    out = pl.pallas_call(
        kernel,
        out_shape=jax.ShapeDtypeStruct((B, INPUT_DIM), jnp.float32),
        grid_spec=pltpu.PrefetchScalarGridSpec(
            num_scalar_prefetch=0,
            grid=(num_k,),
            in_specs=[
                pl.BlockSpec((B, tk), lambda k: (0, k)),             # sdf tile
                pl.BlockSpec((VOXEL_OUT, tk), lambda k: (0, k)),     # w_sdf tile
                pl.BlockSpec((B, MISC_DIM), lambda k: (0, 0)),       # misc (resident)
                pl.BlockSpec((32, H), lambda k: (0, 0)),             # input slab
                pl.BlockSpec((L, H + 1, H), lambda k: (0, 0, 0)),    # hidden W|b
                pl.BlockSpec((H + 1, INPUT_DIM), lambda k: (0, 0)),  # final W|b
            ],
            out_specs=pl.BlockSpec((B, INPUT_DIM), lambda k: (0, 0)),
            scratch_shapes=[pltpu.VMEM((B, VOXEL_OUT), jnp.float32)],
        ),
        compiler_params=pltpu.CompilerParams(
            dimension_semantics=("arbitrary",)),
        cost_estimate=pl.CostEstimate(
            flops=flops,
            transcendentals=transcendentals,
            bytes_accessed=bytes_accessed,
        ),
    )(*operands)
    return out


def velocity_network_forward(params, so3_inputs, r3_inputs, sdf_inputs, t,
                             normalization_scale):
    """Mirrors VelocityNetwork.forward (sdf_path=None branch)."""
    B = so3_inputs.shape[0]

    # t: [B] -> [B, 1]; [B, 1, 1] -> [B, 1]
    if t.ndim == 1:
        t = t[:, None]
    elif t.ndim == 3:
        t = jnp.squeeze(t, axis=1)
    t = t.reshape(B, 1).astype(jnp.float32)

    # flattened SDF grid, cast to bf16 in the wrapper (halves HBM bytes)
    sdf_flat = sdf_inputs.reshape(B, -1).astype(jnp.bfloat16)

    # normalization_scale -> [B, 1] (kept f32 to avoid precision loss)
    ns = jnp.atleast_1d(normalization_scale).reshape(-1, 1).astype(jnp.float32)
    if ns.shape[0] == 1 and B > 1:
        ns = jnp.broadcast_to(ns, (B, 1))
    assert ns.shape == (B, 1), f"unexpected normalization_scale shape {ns.shape}"

    so3_flat = so3_inputs.reshape(B, 9).astype(jnp.float32)
    r3 = r3_inputs.reshape(B, 3).astype(jnp.float32)

    # single [B, 14] operand: [so3(9) | r3(3) | ns(1) | t(1)]
    misc = jnp.concatenate([so3_flat, r3, ns, t], axis=-1)

    out = velocity_mlp_fused(params, sdf_flat, misc)     # [B, 12]
    so3_velocity = out[:, :9].reshape(B, 3, 3)
    r3_velocity = out[:, 9:12]
    return so3_velocity, r3_velocity


# ------------------------- deterministic parameters --------------------------
def init_params(key):
    V = VOXEL_RES ** 3
    F = FEAT_DIM
    H = HIDDEN_DIM
    L = NUM_HIDDEN_LAYERS

    def uni(k, shape, fan_in):
        bound = 1.0 / jnp.sqrt(jnp.float32(fan_in))
        return jax.random.uniform(k, shape, jnp.float32, -bound, bound)

    ks = jax.random.split(key, 10)
    # ---- raw (PyTorch-layout, [in, out]) parameters --------------------------
    w_sdf = uni(ks[0], (VOXEL_OUT, V), V)    # stand-in linear SDF encoder [out, V]
    b_sdf = uni(ks[1], (1, VOXEL_OUT), V)
    wt = uni(ks[2], (1, H), 1)               # time_proj Linear(1, H)
    bt = uni(ks[3], (1, H), 1)
    win = uni(ks[4], (F, H), F)              # input_proj Linear(F, H)
    bin_ = uni(ks[5], (1, H), F)
    wh = uni(ks[6], (L, H, H), H)            # hidden Linear(H, H) * L
    bh = uni(ks[7], (L, 1, H), H)
    wf = uni(ks[8], (H, INPUT_DIM), H)       # final Linear(H, 12)
    bf = uni(ks[9], (1, INPUT_DIM), H)

    # ---- folds (zero in-kernel cost) -----------------------------------------
    # 1. fold the SDF-encoder bias through input_proj into the input bias:
    #    (sdf@W^T + b_sdf) @ win_sdf == sdf@W^T@win_sdf + (b_sdf @ win_sdf)
    win_sdf = win[:VOXEL_OUT]                               # [VO, H]
    win_misc = win[VOXEL_OUT:]                              # [13, H]
    bin_folded = bin_ + b_sdf @ win_sdf                     # [1, H]
    # 2. fold the skew antisymmetrization 0.5*(V - V^T) into the final layer:
    #    W_skew[:, 3k+j] = 0.5*(wf[:, 3k+j] - wf[:, 3j+k])  (diagonal -> 0)
    perm = jnp.array([3 * (c % 3) + (c // 3) for c in range(9)])
    wf_skew = jnp.concatenate([0.5 * (wf[:, :9] - wf[:, :9][:, perm]),
                               wf[:, 9:]], axis=1)
    bf_skew = jnp.concatenate([0.5 * (bf[:, :9] - bf[:, :9][:, perm]),
                               bf[:, 9:]], axis=1)

    # ---- packing for the kernel (fewer DMAs, lane-dense weight layouts) ------
    return {
        # SDF weight transposed [out, V] (V on lanes -> no 8x lane padding), bf16
        "w_sdf": w_sdf.astype(jnp.bfloat16),
        # [win_sdf(16) | win_misc(13) | wt(1) | bt(1) | bin(1)] -> [32, H]
        "w_in_slab": jnp.concatenate([win_sdf, win_misc, wt, bt, bin_folded],
                                     axis=0),
        # hidden weight+bias packed: [L, H+1, H]
        "wh_aug": jnp.concatenate([wh, bh], axis=1),
        # final weight+bias packed (skew-folded): [H+1, 12]
        "wf_aug": jnp.concatenate([wf_skew, bf_skew], axis=0),
    }


# --------------------------------- main ---------------------------------------
if __name__ == "__main__":
    key = jax.random.PRNGKey(0)
    k_param, k_so3, k_r3, k_sdf, k_t, k_ns = jax.random.split(key, 6)

    params = init_params(k_param)

    so3_inputs = jax.random.normal(k_so3, (BATCH, 3, 3), jnp.float32)
    r3_inputs = jax.random.normal(k_r3, (BATCH, 3), jnp.float32)
    sdf_inputs = jax.random.normal(
        k_sdf, (BATCH, VOXEL_RES, VOXEL_RES, VOXEL_RES), jnp.float32
    )
    t = jax.random.uniform(k_t, (BATCH,), jnp.float32)
    normalization_scale = jax.random.uniform(k_ns, (BATCH,), jnp.float32)

    so3_vel, r3_vel = jax.block_until_ready(
        velocity_network_forward(
            params, so3_inputs, r3_inputs, sdf_inputs, t, normalization_scale
        )
    )

    assert so3_vel.shape == (BATCH, 3, 3)
    assert r3_vel.shape == (BATCH, 3)
    assert jnp.all(jnp.isfinite(so3_vel)) and jnp.all(jnp.isfinite(r3_vel))
    print("KERNEL_OK")
</pallas_src>

<mosaic_0001>
module attributes {stable_mosaic.version = 11 : i64} {
  func.func @_velocity_fused_kernel(%arg0: i32, %arg1: memref<2x2048xbf16, #tpu.memory_space<vmem>>, %arg2: memref<16x2048xbf16, #tpu.memory_space<vmem>>, %arg3: memref<2x14xf32, #tpu.memory_space<vmem>>, %arg4: memref<32x32xf32, #tpu.memory_space<vmem>>, %arg5: memref<2x33x32xf32, #tpu.memory_space<vmem>>, %arg6: memref<33x12xf32, #tpu.memory_space<vmem>>, %arg7: memref<2x12xf32, #tpu.memory_space<vmem>>, %arg8: memref<2x16xf32, #tpu.memory_space<vmem>>) attributes {dimension_semantics = [#tpu.dimension_semantics<arbitrary>], iteration_bounds = array<i64: 2>, scalar_prefetch = 0 : i64, scratch_operands = 1 : i64, tpu.core_type = #tpu.core_type<tc>, window_params = [{transform_indices = @transform_0, window_bounds = array<i64: 2, 2048>}, {transform_indices = @transform_1, window_bounds = array<i64: 16, 2048>}, {pipeline_mode = #tpu.pipeline_mode<synchronous>, transform_indices = @transform_2, window_bounds = array<i64: 2, 14>}, {pipeline_mode = #tpu.pipeline_mode<synchronous>, transform_indices = @transform_3, window_bounds = array<i64: 32, 32>}, {pipeline_mode = #tpu.pipeline_mode<synchronous>, transform_indices = @transform_4, window_bounds = array<i64: 2, 33, 32>}, {pipeline_mode = #tpu.pipeline_mode<synchronous>, transform_indices = @transform_5, window_bounds = array<i64: 33, 12>}, {pipeline_mode = #tpu.pipeline_mode<synchronous>, transform_indices = @transform_6, window_bounds = array<i64: 2, 12>}]} {
    %c0_i32 = arith.constant 0 : i32
    %0 = arith.cmpi eq, %arg0, %c0_i32 : i32
    %1 = arith.extui %0 : i1 to i32
    %c0_i32_0 = arith.constant 0 : i32
    %2 = arith.cmpi ne, %1, %c0_i32_0 : i32
    scf.if %2 {
      %cst_9 = arith.constant 0.000000e+00 : f32
      %12 = vector.broadcast %cst_9 : f32 to vector<2x16xf32>
      %c0_10 = arith.constant 0 : index
      %c0_11 = arith.constant 0 : index
      %13 = vector.load %arg8[%c0_10, %c0_11] : memref<2x16xf32, #tpu.memory_space<vmem>>, vector<2x16xf32>
      tpu.vector_store %arg8[%c0_10, %c0_11], %12 {strides = array<i32>} : memref<2x16xf32, #tpu.memory_space<vmem>>, vector<2x16xf32>,
    } else {
    }
    %c0 = arith.constant 0 : index
    %c0_1 = arith.constant 0 : index
    %3 = vector.load %arg8[%c0, %c0_1] : memref<2x16xf32, #tpu.memory_space<vmem>>, vector<2x16xf32>
    %c0_2 = arith.constant 0 : index
    %c0_3 = arith.constant 0 : index
    %4 = vector.load %arg1[%c0_2, %c0_3] : memref<2x2048xbf16, #tpu.memory_space<vmem>>, vector<2x2048xbf16>
    %c0_4 = arith.constant 0 : index
    %c0_5 = arith.constant 0 : index
    %5 = vector.load %arg2[%c0_4, %c0_5] : memref<16x2048xbf16, #tpu.memory_space<vmem>>, vector<16x2048xbf16>
    %cst = arith.constant dense<0.000000e+00> : vector<2x16xf32>
    %6 = tpu.matmul %4, %5, %cst {dimension_numbers = #tpu.dot_dimension_numbers<[1], [1], [0], [0], [0, 0, 1, 0], [], []>} : vector<2x2048xbf16>, vector<16x2048xbf16>, vector<2x16xf32> -> vector<2x16xf32>
    %7 = arith.addf %3, %6 : vector<2x16xf32>
    %c0_6 = arith.constant 0 : index
    %c0_7 = arith.constant 0 : index
    %8 = vector.load %arg8[%c0_6, %c0_7] : memref<2x16xf32, #tpu.memory_space<vmem>>, vector<2x16xf32>
    tpu.vector_store %arg8[%c0_6, %c0_7], %7 {strides = array<i32>} : memref<2x16xf32, #tpu.memory_space<vmem>>, vector<2x16xf32>,
    %c1_i32 = arith.constant 1 : i32
    %9 = arith.cmpi eq, %arg0, %c1_i32 : i32
    %10 = arith.extui %9 : i1 to i32
    %c0_i32_8 = arith.constant 0 : i32
    %11 = arith.cmpi ne, %10, %c0_i32_8 : i32
    scf.if %11 {
      %c0_9 = arith.constant 0 : index
      %c0_10 = arith.constant 0 : index
      %12 = vector.load %arg8[%c0_9, %c0_10] : memref<2x16xf32, #tpu.memory_space<vmem>>, vector<2x16xf32>
      %c0_11 = arith.constant 0 : index
      %c0_12 = arith.constant 0 : index
      %13 = vector.load %arg3[%c0_11, %c0_12] : memref<2x14xf32, #tpu.memory_space<vmem>>, vector<2x14xf32>
      %c0_13 = arith.constant 0 : index
      %c0_14 = arith.constant 0 : index
      %14 = vector.load %arg4[%c0_13, %c0_14] : memref<32x32xf32, #tpu.memory_space<vmem>>, vector<32x32xf32>
      %15 = vector.extract_strided_slice %14 {offsets = [0, 0], sizes = [16, 32], strides = [1, 1]} : vector<32x32xf32> to vector<16x32xf32>
      %16 = vector.extract_strided_slice %14 {offsets = [16, 0], sizes = [13, 32], strides = [1, 1]} : vector<32x32xf32> to vector<13x32xf32>
      %17 = vector.extract_strided_slice %14 {offsets = [29, 0], sizes = [1, 32], strides = [1, 1]} : vector<32x32xf32> to vector<1x32xf32>
      %18 = vector.extract_strided_slice %14 {offsets = [30, 0], sizes = [1, 32], strides = [1, 1]} : vector<32x32xf32> to vector<1x32xf32>
      %19 = vector.extract_strided_slice %14 {offsets = [31, 0], sizes = [1, 32], strides = [1, 1]} : vector<32x32xf32> to vector<1x32xf32>
      %20 = vector.extract_strided_slice %13 {offsets = [0, 13], sizes = [2, 1], strides = [1, 1]} : vector<2x14xf32> to vector<2x1xf32>
      %21 = vector.broadcast %20 : vector<2x1xf32> to vector<2x32xf32>
      %22 = vector.broadcast %17 : vector<1x32xf32> to vector<2x32xf32>
      %23 = arith.mulf %21, %22 : vector<2x32xf32>
      %24 = vector.broadcast %18 : vector<1x32xf32> to vector<2x32xf32>
      %25 = arith.addf %23, %24 : vector<2x32xf32>
      %26 = arith.negf %25 : vector<2x32xf32>
      %27 = math.exp %26 : vector<2x32xf32>
      %cst_15 = arith.constant 1.000000e+00 : f32
      %28 = vector.broadcast %cst_15 : f32 to vector<2x32xf32>
      %29 = arith.addf %28, %27 : vector<2x32xf32>
      %30 = arith.divf %28, %29 : vector<2x32xf32>
      %31 = arith.mulf %25, %30 : vector<2x32xf32>
      %cst_16 = arith.constant dense<0.000000e+00> : vector<2x32xf32>
      %32 = tpu.matmul %12, %15, %cst_16 {dimension_numbers = #tpu.dot_dimension_numbers<[1], [0], [0], [1], [0, 0, 1, 1], [], []>} : vector<2x16xf32>, vector<16x32xf32>, vector<2x32xf32> -> vector<2x32xf32>
      %33 = vector.extract_strided_slice %13 {offsets = [0, 0], sizes = [2, 13], strides = [1, 1]} : vector<2x14xf32> to vector<2x13xf32>
      %cst_17 = arith.constant dense<0.000000e+00> : vector<2x32xf32>
      %34 = tpu.matmul %33, %16, %cst_17 {dimension_numbers = #tpu.dot_dimension_numbers<[1], [0], [0], [1], [0, 0, 1, 1], [], []>} : vector<2x13xf32>, vector<13x32xf32>, vector<2x32xf32> -> vector<2x32xf32>
      %35 = arith.addf %32, %34 : vector<2x32xf32>
      %36 = vector.broadcast %19 : vector<1x32xf32> to vector<2x32xf32>
      %37 = arith.addf %35, %36 : vector<2x32xf32>
      %38 = arith.addf %37, %31 : vector<2x32xf32>
      %39 = arith.negf %38 : vector<2x32xf32>
      %40 = math.exp %39 : vector<2x32xf32>
      %cst_18 = arith.constant 1.000000e+00 : f32
      %41 = vector.broadcast %cst_18 : f32 to vector<2x32xf32>
      %42 = arith.addf %41, %40 : vector<2x32xf32>
      %43 = arith.divf %41, %42 : vector<2x32xf32>
      %44 = arith.mulf %38, %43 : vector<2x32xf32>
      %c0_19 = arith.constant 0 : index
      %c0_20 = arith.constant 0 : index
      %c0_21 = arith.constant 0 : index
      %45 = vector.load %arg5[%c0_19, %c0_20, %c0_21] : memref<2x33x32xf32, #tpu.memory_space<vmem>>, vector<1x33x32xf32>
      %46 = vector.shape_cast %45 : vector<1x33x32xf32> to vector<33x32xf32>
      %47 = vector.extract_strided_slice %46 {offsets = [0, 0], sizes = [32, 32], strides = [1, 1]} : vector<33x32xf32> to vector<32x32xf32>
      %cst_22 = arith.constant dense<0.000000e+00> : vector<2x32xf32>
      %48 = tpu.matmul %44, %47, %cst_22 {dimension_numbers = #tpu.dot_dimension_numbers<[1], [0], [0], [1], [0, 0, 1, 1], [], []>} : vector<2x32xf32>, vector<32x32xf32>, vector<2x32xf32> -> vector<2x32xf32>
      %49 = vector.extract_strided_slice %46 {offsets = [32, 0], sizes = [1, 32], strides = [1, 1]} : vector<33x32xf32> to vector<1x32xf32>
      %50 = vector.broadcast %49 : vector<1x32xf32> to vector<2x32xf32>
      %51 = arith.addf %48, %50 : vector<2x32xf32>
      %52 = arith.negf %51 : vector<2x32xf32>
      %53 = math.exp %52 : vector<2x32xf32>
      %cst_23 = arith.constant 1.000000e+00 : f32
      %54 = vector.broadcast %cst_23 : f32 to vector<2x32xf32>
      %55 = arith.addf %54, %53 : vector<2x32xf32>
      %56 = arith.divf %54, %55 : vector<2x32xf32>
      %57 = arith.mulf %51, %56 : vector<2x32xf32>
      %c1 = arith.constant 1 : index
      %c0_24 = arith.constant 0 : index
      %c0_25 = arith.constant 0 : index
      %58 = vector.load %arg5[%c1, %c0_24, %c0_25] : memref<2x33x32xf32, #tpu.memory_space<vmem>>, vector<1x33x32xf32>
      %59 = vector.shape_cast %58 : vector<1x33x32xf32> to vector<33x32xf32>
      %60 = vector.extract_strided_slice %59 {offsets = [0, 0], sizes = [32, 32], strides = [1, 1]} : vector<33x32xf32> to vector<32x32xf32>
      %cst_26 = arith.constant dense<0.000000e+00> : vector<2x32xf32>
      %61 = tpu.matmul %57, %60, %cst_26 {dimension_numbers = #tpu.dot_dimension_numbers<[1], [0], [0], [1], [0, 0, 1, 1], [], []>} : vector<2x32xf32>, vector<32x32xf32>, vector<2x32xf32> -> vector<2x32xf32>
      %62 = vector.extract_strided_slice %59 {offsets = [32, 0], sizes = [1, 32], strides = [1, 1]} : vector<33x32xf32> to vector<1x32xf32>
      %63 = vector.broadcast %62 : vector<1x32xf32> to vector<2x32xf32>
      %64 = arith.addf %61, %63 : vector<2x32xf32>
      %65 = arith.negf %64 : vector<2x32xf32>
      %66 = math.exp %65 : vector<2x32xf32>
      %cst_27 = arith.constant 1.000000e+00 : f32
      %67 = vector.broadcast %cst_27 : f32 to vector<2x32xf32>
      %68 = arith.addf %67, %66 : vector<2x32xf32>
      %69 = arith.divf %67, %68 : vector<2x32xf32>
      %70 = arith.mulf %64, %69 : vector<2x32xf32>
      %c0_28 = arith.constant 0 : index
      %c0_29 = arith.constant 0 : index
      %71 = vector.load %arg6[%c0_28, %c0_29] : memref<33x12xf32, #tpu.memory_space<vmem>>, vector<33x12xf32>
      %72 = vector.extract_strided_slice %71 {offsets = [0, 0], sizes = [32, 12], strides = [1, 1]} : vector<33x12xf32> to vector<32x12xf32>
      %cst_30 = arith.constant dense<0.000000e+00> : vector<2x12xf32>
      %73 = tpu.matmul %70, %72, %cst_30 {dimension_numbers = #tpu.dot_dimension_numbers<[1], [0], [0], [1], [0, 0, 1, 1], [], []>} : vector<2x32xf32>, vector<32x12xf32>, vector<2x12xf32> -> vector<2x12xf32>
      %74 = vector.extract_strided_slice %71 {offsets = [32, 0], sizes = [1, 12], strides = [1, 1]} : vector<33x12xf32> to vector<1x12xf32>
      %75 = vector.broadcast %74 : vector<1x12xf32> to vector<2x12xf32>
      %76 = arith.addf %73, %75 : vector<2x12xf32>
      %77 = vector.extract_strided_slice %13 {offsets = [0, 0], sizes = [2, 1], strides = [1, 1]} : vector<2x14xf32> to vector<2x1xf32>
      %78 = vector.extract_strided_slice %13 {offsets = [0, 1], sizes = [2, 1], strides = [1, 1]} : vector<2x14xf32> to vector<2x1xf32>
      %79 = vector.extract_strided_slice %13 {offsets = [0, 2], sizes = [2, 1], strides = [1, 1]} : vector<2x14xf32> to vector<2x1xf32>
      %80 = vector.extract_strided_slice %13 {offsets = [0, 3], sizes = [2, 1], strides = [1, 1]} : vector<2x14xf32> to vector<2x1xf32>
      %81 = vector.extract_strided_slice %13 {offsets = [0, 4], sizes = [2, 1], strides = [1, 1]} : vector<2x14xf32> to vector<2x1xf32>
      %82 = vector.extract_strided_slice %13 {offsets = [0, 5], sizes = [2, 1], strides = [1, 1]} : vector<2x14xf32> to vector<2x1xf32>
      %83 = vector.extract_strided_slice %13 {offsets = [0, 6], sizes = [2, 1], strides = [1, 1]} : vector<2x14xf32> to vector<2x1xf32>
      %84 = vector.extract_strided_slice %13 {offsets = [0, 7], sizes = [2, 1], strides = [1, 1]} : vector<2x14xf32> to vector<2x1xf32>
      %85 = vector.extract_strided_slice %13 {offsets = [0, 8], sizes = [2, 1], strides = [1, 1]} : vector<2x14xf32> to vector<2x1xf32>
      %86 = vector.extract_strided_slice %76 {offsets = [0, 1], sizes = [2, 1], strides = [1, 1]} : vector<2x12xf32> to vector<2x1xf32>
      %87 = vector.extract_strided_slice %76 {offsets = [0, 2], sizes = [2, 1], strides = [1, 1]} : vector<2x12xf32> to vector<2x1xf32>
      %88 = vector.extract_strided_slice %76 {offsets = [0, 3], sizes = [2, 1], strides = [1, 1]} : vector<2x12xf32> to vector<2x1xf32>
      %89 = vector.extract_strided_slice %76 {offsets = [0, 5], sizes = [2, 1], strides = [1, 1]} : vector<2x12xf32> to vector<2x1xf32>
      %90 = vector.extract_strided_slice %76 {offsets = [0, 6], sizes = [2, 1], strides = [1, 1]} : vector<2x12xf32> to vector<2x1xf32>
      %91 = vector.extract_strided_slice %76 {offsets = [0, 7], sizes = [2, 1], strides = [1, 1]} : vector<2x12xf32> to vector<2x1xf32>
      %92 = arith.mulf %78, %88 : vector<2x1xf32>
      %93 = arith.mulf %79, %90 : vector<2x1xf32>
      %94 = arith.addf %92, %93 : vector<2x1xf32>
      %95 = arith.mulf %77, %86 : vector<2x1xf32>
      %96 = arith.mulf %79, %91 : vector<2x1xf32>
      %97 = arith.addf %95, %96 : vector<2x1xf32>
      %98 = arith.mulf %77, %87 : vector<2x1xf32>
      %99 = arith.mulf %78, %89 : vector<2x1xf32>
      %100 = arith.addf %98, %99 : vector<2x1xf32>
      %101 = arith.mulf %81, %88 : vector<2x1xf32>
      %102 = arith.mulf %82, %90 : vector<2x1xf32>
      %103 = arith.addf %101, %102 : vector<2x1xf32>
      %104 = arith.mulf %80, %86 : vector<2x1xf32>
      %105 = arith.mulf %82, %91 : vector<2x1xf32>
      %106 = arith.addf %104, %105 : vector<2x1xf32>
      %107 = arith.mulf %80, %87 : vector<2x1xf32>
      %108 = arith.mulf %81, %89 : vector<2x1xf32>
      %109 = arith.addf %107, %108 : vector<2x1xf32>
      %110 = arith.mulf %84, %88 : vector<2x1xf32>
      %111 = arith.mulf %85, %90 : vector<2x1xf32>
      %112 = arith.addf %110, %111 : vector<2x1xf32>
      %113 = arith.mulf %83, %86 : vector<2x1xf32>
      %114 = arith.mulf %85, %91 : vector<2x1xf32>
      %115 = arith.addf %113, %114 : vector<2x1xf32>
      %116 = arith.mulf %83, %87 : vector<2x1xf32>
      %117 = arith.mulf %84, %89 : vector<2x1xf32>
      %118 = arith.addf %116, %117 : vector<2x1xf32>
      %119 = vector.extract_strided_slice %76 {offsets = [0, 9], sizes = [2, 3], strides = [1, 1]} : vector<2x12xf32> to vector<2x3xf32>
      %120 = tpu.concatenate %94, %97, %100, %103, %106, %109, %112, %115, %118, %119 in 1 : vector<2x1xf32>, vector<2x1xf32>, vector<2x1xf32>, vector<2x1xf32>, vector<2x1xf32>, vector<2x1xf32>, vector<2x1xf32>, vector<2x1xf32>, vector<2x1xf32>, vector<2x3xf32> -> vector<2x12xf32>
      %c0_31 = arith.constant 0 : index
      %c0_32 = arith.constant 0 : index
      %121 = vector.load %arg7[%c0_31, %c0_32] : memref<2x12xf32, #tpu.memory_space<vmem>>, vector<2x12xf32>
      tpu.vector_store %arg7[%c0_31, %c0_32], %120 {strides = array<i32>} : memref<2x12xf32, #tpu.memory_space<vmem>>, vector<2x12xf32>,
    } else {
    }
    return
  }
  func.func @transform_0(%arg0: i32) -> (i32, i32) {
    %c0_i32 = arith.constant 0 : i32
    %c0_i32_0 = arith.constant 0 : i32
    return %c0_i32, %arg0 : i32, i32
  }
  func.func @transform_1(%arg0: i32) -> (i32, i32) {
    %c0_i32 = arith.constant 0 : i32
    %c0_i32_0 = arith.constant 0 : i32
    return %c0_i32, %arg0 : i32, i32
  }
  func.func @transform_2(%arg0: i32) -> (i32, i32) {
    %c0_i32 = arith.constant 0 : i32
    %c0_i32_0 = arith.constant 0 : i32
    %c0_i32_1 = arith.constant 0 : i32
    return %c0_i32, %c0_i32_0 : i32, i32
  }
  func.func @transform_3(%arg0: i32) -> (i32, i32) {
    %c0_i32 = arith.constant 0 : i32
    %c0_i32_0 = arith.constant 0 : i32
    %c0_i32_1 = arith.constant 0 : i32
    return %c0_i32, %c0_i32_0 : i32, i32
  }
  func.func @transform_4(%arg0: i32) -> (i32, i32, i32) {
    %c0_i32 = arith.constant 0 : i32
    %c0_i32_0 = arith.constant 0 : i32
    %c0_i32_1 = arith.constant 0 : i32
    %c0_i32_2 = arith.constant 0 : i32
    return %c0_i32, %c0_i32_0, %c0_i32_1 : i32, i32, i32
  }
  func.func @transform_5(%arg0: i32) -> (i32, i32) {
    %c0_i32 = arith.constant 0 : i32
    %c0_i32_0 = arith.constant 0 : i32
    %c0_i32_1 = arith.constant 0 : i32
    return %c0_i32, %c0_i32_0 : i32, i32
  }
  func.func @transform_6(%arg0: i32) -> (i32, i32) {
    %c0_i32 = arith.constant 0 : i32
    %c0_i32_0 = arith.constant 0 : i32
    %c0_i32_1 = arith.constant 0 : i32
    return %c0_i32, %c0_i32_0 : i32, i32
  }
}

</mosaic_0001>

<bundles_post_ra>
// kernel: tpu_custom_call.1
= control target key start
LH: loop header
LB: loop body
LE: loop exit
PB: predicated region body
PF: predicated region fallthrough
CT: control target
= control target key end

     0   :  { %11 = vsyncpa [#allocation4], 0  ;;  %s2126_s0 = inlined_call_operand.vmem [shape: bf16[2,4096], index: 0, kind: input, shape index: {}]   ;;  %s2127_s1 = inlined_call_operand.hbm [shape: bf16[16,4096], index: 1, kind: input, shape index: {}]   ;;  %s2128_s2 = inlined_call_operand.vmem [shape: f32[2,14], index: 2, kind: input, shape index: {}]   ;;  %s2129_s3 = inlined_call_operand.vmem [shape: f32[32,32], index: 3, kind: input, shape index: {}]   ;;  %s2130_s4 = inlined_call_operand.vmem [shape: f32[2,33,32], index: 4, kind: input, shape index: {}]   ;;  %s2131_s5 = inlined_call_operand.vmem [shape: f32[33,12], index: 5, kind: input, shape index: {}]   ;;  %s2132_s6 = inlined_call_operand.hbm [shape: f32[2,12], index: 6, kind: output, shape index: {}]  }
   0x1   :  { %13 = vsyncpa [#allocation4 + $0x1], 0 }
   0x2   :  { %14 = vsyncpa [#allocation5], 0  ;;  %s1840_s21 = smov 0   ;;  %s1842_s22 = smov 0  }
   0x3   :  { %s1844_s23 = smov 0   ;;  %s1846_s24 = smov 0  }
   0x4 LB: > { %s1859_s25 = sadd.s32 4294967295, %s1783_s24   ;;  %s1862_s26 = sadd.s32 1, %s1783_s24   ;;  %s1783_s24 = sphi %s1846_s24, %s2138_s24   ;;  %s1779_s23 = sphi %s1844_s23, %s2137_s23   ;;  %s1775_s22 = sphi %s1842_s22, %s2136_s22   ;;  %s1771_s21 = sphi %s1840_s21, %s2135_s21  }
   0x5   : > { %s50_s27 = ssub.s32 %s1783_s24, %s1862_s26  ;;  %s53_s28 = sadd.s32 1, %s1779_s23 }
   0x6   : > { %p51_p0 = scmp.eq.s32.totalorder %s50_s27, 0  ;;  %p60_p1 = scmp.ne.s32.totalorder %s1779_s23, %s1775_s22 }
   0x7   : > { %p61_p2 = scmp.eq.s32.totalorder %s1783_s24, 0  ;;  %p66_p3 = scmp.ne.s32.totalorder %s1775_s22, %s1771_s21 }
   0x8   : > { %s1872_s29 = scalar_select %p51_p0, %s1779_s23, %s53_s28  }
   0x9   : > { %p62_p4 = por %p61_p2, %p60_p1  ;;  %p67_p5 = scmp.eq.s32.totalorder %s1859_s25, 0 }
   0xa   : > { %p1616_p6 = scmp.lt.s32.totalorder %s1783_s24, 2  ;;  %s215_s7 = sand.u32 1, %s1779_s23  }
   0xb   : > { %p1876_p7 = por %p67_p5, %p66_p3  ;;  %s1466_s8 = sshll.u32 %s215_s7, 7 }
   0xc   : > { %s1512_s9 = sshll.u32 %s1783_s24, 10  ;;  %s219_s13 = scalar_lea.vmem [#allocation3], %s1466_s8 }
   0xd   : > { %s1885_s12 = scalar_lea.hbm %s2127_s1, %s1512_s9  ;;  %s226_s14 = sshll.u32 %s219_s13, 4  ;;  %s1887_s14 = int_to_ptr.vmem [resolvable:$true] %s226_s14 }
   0xe   : > { %p1889_p8 = pnand %p1616_p6, %p62_p4  ;;  %s1893_s16 = scalar_lea.sflag [#allocation4], %s215_s7 }
   0xf   : > { %s1689_s17 = scalar_lea.hbm %s1885_s12, 2048  ;;  %s1694_s20 = scalar_lea.hbm %s2127_s1, 4096 }
  0x10   : > { %p1690_p9 = scmp.ne.s32.totalorder %s1885_s12, %s1689_s17  ;;  %p1691_p10 = pneg %p1889_p8 }
  0x11   : > { %p1695_p13 = scmp.lt.u32.totalorder %s1885_s12, %s2127_s1  ;;  %p1696_p0 = scmp.lt.u32.totalorder %s1694_s20, %s1689_s17 }
  0x12   : > { %p1692_p11 = pnand %p1691_p10, %p1690_p9  ;;  %p1698_p2 = scmp.lt.u32.totalorder %s1689_s17, %s1885_s12 }
  0x13   : > { %p1697_p1 = por %p1696_p0, %p1695_p13 }
  0x14   : > { %p1693_p12 = pneg %p1692_p11 }
  0x15   : > { %p1699_p3 = por %p1698_p2, %p1697_p1 }
  0x17   : > { %p1700_p4 = pnand %p1699_p3, %p1693_p12 }
  0x19   : > { %1703 = shalt.err (!%p1700_p4)
}
  0x1a   : > { %s1704_s28 = scalar_lea.vmem %s1887_s14, 2048  ;;  %s1785_s7 = smov [#allocation3]  }
  0x1b   : > { %p1705_p5 = scmp.ne.s32.totalorder %s1887_s14, %s1704_s28  ;;  %s1709_s8 = sshll.u32 %s1785_s7, 4  ;;  %s1710_s8 = int_to_ptr.vmem [resolvable:$false] %s1709_s8 }
  0x1c   : > { %s1711_s9 = scalar_lea.vmem %s1710_s8, 4096  ;;  %p1712_p11 = scmp.lt.s32.totalorder %s1887_s14, %s1710_s8 }
  0x1d   : > { %p1707_p6 = pnand %p1705_p5, %p1691_p10  ;;  %p1713_p13 = scmp.lt.s32.totalorder %s1711_s9, %s1704_s28 }
  0x1f   : > { %p1708_p9 = pneg %p1707_p6  ;;  %p1714_p0 = por %p1713_p13, %p1712_p11 }
  0x21   : > { %p1715_p1 = pnand %p1714_p0, %p1708_p9 }
  0x23   : > { %1718 = shalt.err (!%p1715_p1)
}
  0x24   : > { %s1786_s10 = smov 2048   ;;  %s1787_s11 = smov 1024  }
  0x25   : > { %s1788_s13 = smov 64   ;;  %p1469_p10 = scmp.ge.s32.totalorder %s1783_s24, 1 }
  0x26   : > { %1615 = dma.hbm_to_vmem [thread:$0]  (!%p1889_p8), %s1885_s12, 2048, %s1887_s14, %s1893_s16, %s1786_s10, %s1787_s11, %s1788_s13  }
  0x27   : > { %p234_p12 = scmp.lt.s32.totalorder %s1783_s24, 3 }
  0x29   : > { %p235_p2 = pnand %p1469_p10, %p234_p12 }
  0x2a   : > { %s240_s17 = sand.u32 (!%p235_p2), 1, %s1775_s22  }
  0x2b   : > { %238 = sbr.rel (%p235_p2) target bundleno = 1661 (0x67d), region = 44  ;;  %s1470_s18 = sshll.u32 (!%p235_p2), %s240_s17, 7 }
  0x2c   : > { %s241_s19 = scalar_lea.sflag (!%p235_p2), [#allocation4], %s240_s17  ;;  %s1924_s20 = scalar_lea.vmem (!%p235_p2), [#allocation3], %s1470_s18 }
  0x32   : > { %1762 = dma.done.wait (%p1876_p7), %s241_s19, 2048  }
  0x33   : > { %1764 = vsyncadd (%p1876_p7), %s241_s19, 4294965248  ;;  %s1471_s21 = sshll.u32 %s1859_s25, 4  ;;  %p1472_p8 = scmp.ne.s32.totalorder %s1859_s25, 0 }
  0x34   : > { %p273_p3 = scmp.lt.s32.totalorder %s1471_s21, 31  ;;  %vm283_vm0 = vcmask (!%p1472_p8), 123904   ;;  %v1789_v0 = vmov (!%p1472_p8), 0.0  }
  0x35   : > { %282 = sbr.rel (%p1472_p8) target bundleno = 60 (0x3c), region = 52  ;;  %284 = vst.msk [vmem:[#allocation2] sm:$0x3] (!%p1472_p8), %vm283_vm0, %v1789_v0 }
  0x36   : > { %s2140_s21 = smov (!%p273_p3, %s1471_s21), 31 }
  0x37   : > { %s1934_s14 = scalar_lea.vmem %s2126_s0, %s2140_s21 }
  0x3c PF: > { %v288_v1 = vld [vmem:[%s1924_s20] sm:$0xff]  ;;  %v289_v3 = vld [vmem:[%s1924_s20 + $0x8] sm:$0xff]  ;;  %v310_v4 = vlaneseq  ;;  %v1790_v9 = vmov 1966171168   ;;  %v290_v11 = vld [vmem:[%s1924_s20 + $0x10] sm:$0xff]  ;;  %vm821_vm1 = vcmask 123904  }
  0x3d   : > { %v296_v2 = vld [vmem:[%s1924_s20 + $0x40] sm:$0xff]  ;;  %v297_v7 = vld [vmem:[%s1924_s20 + $0x48] sm:$0xff]  ;;  %v308_v10 = vunpack.c.l.s4 %v1790_v9  ;;  %v298_v15 = vld [vmem:[%s1924_s20 + $0x50] sm:$0xff]  ;;  %p1489_p7 = scmp.ne.s32.totalorder %s1859_s25, 1 }
  0x3e   : > { %v1474_v5 = vcombine.high %v288_v1, %v296_v2  ;;  %v1473_v6 = vcombine.low %v288_v1, %v296_v2  ;;  %v286_v8 = vld [vmem:[%s1934_s14] sm:$0xff]  ;;  %v1476_v12 = vcombine.high %v289_v3, %v297_v7  ;;  %v1475_v13 = vcombine.low %v289_v3, %v297_v7  ;;  %v287_v23 = vld [vmem:[%s1934_s14 + $0x8] sm:$0xff]  ;;  %v294_v47 = vld [vmem:[%s1924_s20 + $0x30] sm:$0xff]  ;;  %s1796_s16 = smov (!%p1489_p7), 123   ;;  %s1797_s27 = smov (!%p1489_p7), 124  }
  0x3f   : > { %v1943_v14 = vshrl.u32 %v310_v4, 7  ;;  %v291_v16 = vld [vmem:[%s1924_s20 + $0x18] sm:$0xff]  ;;  %v306_v18 = vcombine.high %v286_v8, %v286_v8  ;;  %v309_v19 = vunpack.c.0.s8 %v308_v10  ;;  %v1478_v20 = vcombine.high %v290_v11, %v298_v15  ;;  %v292_v30 = vld [vmem:[%s1924_s20 + $0x20] sm:$0xff]  ;;  %v293_v35 = vld [vmem:[%s1924_s20 + $0x28] sm:$0xff]  ;;  %s1798_s28 = smov (!%p1489_p7), 127   ;;  %s1799_s7 = smov (!%p1489_p7), 126  }
  0x40   : > { %v299_v17 = vld [vmem:[%s1924_s20 + $0x58] sm:$0xff]  ;;  %500 = vmatprep.subr.bf16.mxu0 %v1474_v5  ;;  %540 = vmatprep.subr.bf16.mxu1 %v1476_v12  ;;  %v300_v31 = vld [vmem:[%s1924_s20 + $0x60] sm:$0xff]  ;;  %v1477_v33 = vcombine.low %v290_v11, %v298_v15  ;;  %v301_v36 = vld [vmem:[%s1924_s20 + $0x68] sm:$0xff]  ;;  %v355_v42 = vcombine.high %v287_v23, %v287_v23  ;;  %vm858_vm2 = vcmask (!%p1489_p7), 1044480   ;;  %vm1792_vm3 = vmmov (!%p1489_p7), 1   ;;  %s1800_s8 = smov (!%p1489_p7), 2  }
  0x41   : > { %501 = vmatpush1.bf16.xpose.msra.mxu0 %v1473_v6  ;;  %v1480_v21 = vcombine.high %v291_v16, %v299_v17  ;;  %541 = vmatpush1.bf16.xpose.msra.mxu1 %v1475_v13  ;;  %v1949_v22 = vsub.s32 %v309_v19, %v1943_v14  ;;  %v1479_v37 = vcombine.low %v291_v16, %v299_v17  ;;  %v302_v48 = vld [vmem:[%s1924_s20 + $0x70] sm:$0xff]  ;;  %v295_v51 = vld [vmem:[%s1924_s20 + $0x38] sm:$0xff]  ;;  %vm1583_vm4 = vmpackc.low (!%p1489_p7), %vm858_vm2, %vm1792_vm3  ;;  %vm1793_vm5 = vmmov (!%p1489_p7), 0   ;;  %s1801_s9 = smov (!%p1489_p7), 1   ;;  %s1802_s10 = smov (!%p1489_p7), 4  }
  0x42   : > { %580 = vmatprep.subr.bf16.mxu0 %v1478_v20  ;;  %v1482_v40 = vcombine.high %v292_v30, %v300_v31  ;;  %v1484_v44 = vcombine.high %v293_v35, %v301_v36  ;;  %v1481_v50 = vcombine.low %v292_v30, %v300_v31  ;;  %v303_v52 = vld [vmem:[%s1924_s20 + $0x78] sm:$0xff]  ;;  %v1486_v54 = vcombine.high %v294_v47, %v302_v48  ;;  %s1803_s11 = smov (!%p1489_p7), 5  }
  0x43   : > { %620 = vmatprep.subr.bf16.mxu1 %v1480_v21  ;;  %v313_v24 = vrot.slane %v286_v8, %v1949_v22  ;;  %v320_v25 = vrot.slane %v306_v18, %v1949_v22  ;;  %v362_v29 = vrot.slane %v287_v23, %v1949_v22  ;;  %v369_v49 = vrot.slane %v355_v42, %v1949_v22 }
  0x44   : > { %v1483_v55 = vcombine.low %v293_v35, %v301_v36  ;;  %v1488_v58 = vcombine.high %v295_v51, %v303_v52  ;;  %v1485_v61 = vcombine.low %v294_v47, %v302_v48  ;;  %v1487_v63 = vcombine.low %v295_v51, %v303_v52  ;;  %v830_v51 = vld [vmem:[%s2129_s3 + $0x8] sm:$0xff] (!%p1489_p7)  ;;  %v1992_v52 = vld [vmem:[%s2128_s2] sm:$0x3] (!%p1489_p7) }
  0x45   : > { %v321_v26 = vcombine.high %v313_v24, %v313_v24  ;;  %v329_v27 = vrot.slane %v313_v24, %v1949_v22  ;;  %v322_v28 = vcombine.high %v320_v25, %v320_v25  ;;  %v370_v41 = vcombine.high %v362_v29, %v362_v29 }
  0x46   : > { %v336_v45 = vrot.slane %v320_v25, %v1949_v22  ;;  %v371_v57 = vcombine.high %v369_v49, %v369_v49  ;;  %v378_v59 = vrot.slane %v362_v29, %v1949_v22  ;;  %v385_v1 = vrot.slane %v369_v49, %v1949_v22  ;;  %v829_v49 = vld [vmem:[%s2129_s3] sm:$0xff] (!%p1489_p7) }
  0x47   : > { %v343_v32 = vrot.slane %v321_v26, %v1949_v22  ;;  %v350_v34 = vrot.slane %v322_v28, %v1949_v22  ;;  %v351_v38 = vcombine.high %v329_v27, %v329_v27  ;;  %v392_v46 = vrot.slane %v370_v41, %v1949_v22 }
  0x48   : > { %v352_v53 = vcombine.high %v336_v45, %v336_v45  ;;  %v399_v60 = vrot.slane %v371_v57, %v1949_v22  ;;  %v400_v62 = vcombine.high %v378_v59, %v378_v59  ;;  %v401_v2 = vcombine.high %v385_v1, %v385_v1  ;;  %v1020_v57 = vld [vmem:[%s2130_s4 + $0x8] sm:$0xff] (!%p1489_p7) }
  0x49   : > { %532 = vmatprep.mubr.bf16.mxu0 %v343_v32  ;;  %v353_v39 = vcombine.high %v343_v32, %v343_v32  ;;  %v354_v43 = vcombine.high %v350_v34, %v350_v34  ;;  %v402_v56 = vcombine.high %v392_v46, %v392_v46  ;;  %v1791_v47 = vmov (!%p1489_p7), 0.0|0.0  }
  0x4a   : > { %533 = vmatmul.mubr.bf16.vlgmr.msra.gmra.mrb[0].mxu0 %v329_v27  ;;  %v403_v0 = vcombine.high %v399_v60, %v399_v60  ;;  %vm855_vm6 = vcmask (!%p1489_p7), 105472   ;;  %vm932_vm7 = vcmask (!%p1489_p7), 130048   ;;  %vm1028_vm8 = vcmask (!%p1489_p7), 261120  }
  0x4b   : > { %581 = vmatpush1.bf16.xpose.msra.mxu0 %v1477_v33  ;;  %572 = vmatprep.mubr.bf16.mxu1 %v353_v39  ;;  %vm1377_vm9 = vcmask (!%p1489_p7), 7168   ;;  %vm1379_vm10 = vcmask (!%p1489_p7), 15360   ;;  %vm1381_vm11 = vcmask (!%p1489_p7), 23552   ;;  %vm1383_vm12 = vcmask (!%p1489_p7), 31744  }
  0x4c   : > { %573 = vmatmul.mubr.bf16.vlgmr.msra.gmra.mrb[0].mxu1 %v351_v38  ;;  %612 = vmatprep.mubr.bf16.mxu0 %v350_v34  ;;  %vm1385_vm13 = vcmask (!%p1489_p7), 39936   ;;  %vm1387_vm14 = vcmask (!%p1489_p7), 48128   ;;  %vm1389_vm15 = vcmask (!%p1489_p7), 56320   ;;  %vm1391_vm0 = vcmask (!%p1489_p7), 64512  }
  0x4d   : > { %621 = vmatpush1.bf16.xpose.msra.mxu1 %v1479_v37  ;;  %660 = vmatprep.subr.bf16.mxu0 %v1482_v40  ;;  %v285_v37 = vld [vmem:[#allocation2] sm:$0x3]  ;;  %vm1395_vm2 = vcmask (!%p1489_p7), 91136  }
  0x4e   : > { %652 = vmatprep.mubr.bf16.mxu1 %v354_v43  ;;  %700 = vmatprep.subr.bf16.mxu1 %v1484_v44 }
  0x52   : > { %613 = vmatmul.mubr.bf16.vlgmr.msra.gmra.mrb[4].mxu0 %v336_v45  ;;  %v831_v45 = vld [vmem:[%s2129_s3 + $0x10] sm:$0xff] (!%p1489_p7) }
  0x53   : > { %661 = vmatpush1.bf16.xpose.msra.mxu0 %v1481_v50  ;;  %692 = vmatprep.mubr.bf16.mxu0 %v392_v46  ;;  %v832_v46 = vld [vmem:[%s2129_s3 + $0x18] sm:$0xff] (!%p1489_p7)  ;;  %v1794_v50 = vmov (!%p1489_p7), 0.0  }
  0x54   : > { %653 = vmatmul.mubr.bf16.vlgmr.msra.gmra.mrb[4].mxu1 %v352_v53  ;;  %740 = vmatprep.subr.bf16.mxu0 %v1486_v54  ;;  %v1582_v48 = vpack.c.bf16 (!%p1489_p7), %v832_v46, %v831_v45  ;;  %v1586_v53 = vpack.c.bf16 (!%p1489_p7), %v830_v51, %v829_v49  ;;  %v1795_v54 = vmov (!%p1489_p7), 13   ;;  %v1503_v45 = vld [vmem:[%s2130_s4 + $0x48] ss:$0 sm:$0xff] (!%p1489_p7) }
  0x55   : > { %701 = vmatpush1.bf16.xpose.msra.mxu1 %v1483_v55  ;;  %732 = vmatprep.mubr.bf16.mxu1 %v402_v56  ;;  %v1019_v56 = vld [vmem:[%s2130_s4] sm:$0xff] (!%p1489_p7) }
  0x56   : > { %780 = vmatprep.subr.bf16.mxu1 %v1488_v58  ;;  %1672 = vset.pattern.permute.xlu0 (!%p1489_p7), %v1795_v54  ;;  %v1589_v58 = vpack.c.bf16 (!%p1489_p7), %v1020_v57, %v1019_v56 }
  0x57   : > { %835 = vperm.xlu0 (!%p1489_p7), %1672, %v1992_v52  }
  0x5a   : > { %693 = vmatmul.mubr.bf16.vlgmr.msra.gmra.mrb[8].mxu0 %v378_v59  ;;  %v1021_v59 = vld [vmem:[%s2130_s4 + $0x10] sm:$0xff] (!%p1489_p7) }
  0x5b   : > { %741 = vmatpush1.bf16.xpose.msra.mxu0 %v1485_v61  ;;  %772 = vmatprep.mubr.bf16.mxu0 %v399_v60  ;;  %v1022_v60 = vld [vmem:[%s2130_s4 + $0x18] sm:$0xff] (!%p1489_p7) }
  0x5c   : > { %733 = vmatmul.mubr.bf16.vlgmr.msra.gmra.mrb[8].mxu1 %v400_v62  ;;  %1588 = vmatprep.subr.bf16.mxu0 (!%p1489_p7), %v1791_v47  ;;  %v1592_v61 = vpack.c.bf16 (!%p1489_p7), %v1022_v60, %v1021_v59  ;;  %v840_v62 = vsub.s32 (!%p1489_p7), 5, %v1943_v14 }
  0x5d   : > { %781 = vmatpush1.bf16.xpose.msra.mxu1 %v1487_v63  ;;  %812 = vmatprep.mubr.bf16.mxu1 %v403_v0  ;;  %v845_v0 = vsub.s32 (!%p1489_p7), 6, %v1943_v14 }
  0x5e   : > { %1581 = vmatprep.subr.bf16.mxu1 (!%p1489_p7), %v1791_v47  ;;  %v841_v63 = vrot.slane (!%p1489_p7), %v832_v46, %v840_v62 }
  0x62   : > { %773 = vmatmul.mubr.bf16.vlgmr.msra.gmra.mrb[12].mxu0 %v385_v1 }
  0x63   : > { %1556 = vmatprep.mubr.msk.f32.mxu0 (!%p1489_p7), %vm1793_vm5, %v1794_v50  ;;  %1590 = vmatpush3.bf16.msra.mxu0 (!%p1489_p7), %v1589_v58 }
  0x64   : > { %813 = vmatmul.mubr.bf16.vlgmr.msra.gmra.mrb[12].mxu1 %v401_v2  ;;  %1591 = vmatprep.subr.bf16.mxu0 (!%p1489_p7), %v1791_v47  ;;  %v846_v2 = vrot.slane (!%p1489_p7), %v832_v46, %v845_v0 }
  0x65   : > { %1538 = vmatprep.mubr.msk.f32.mxu1 (!%p1489_p7), %vm1793_vm5, %v1794_v50  ;;  %1584 = vmatpush3.bf16.msk.msra.mxu1 (!%p1489_p7), %vm1583_vm4, %v1582_v48 }
  0x66   : > { %1585 = vmatprep.subr.bf16.mxu1 (!%p1489_p7), %v1791_v47 }
  0x67   : > { %1593 = vmatpush3.bf16.msra.mxu0 (!%p1489_p7), %v1592_v61 }
  0x68   : > { %1600 = vmatprep.subr.bf16.mxu0 (!%p1489_p7), %v1791_v47 }
  0xd6   : > { %v836_v1 = vpop.permute.xlu0 (!%p1489_p7), %835 }
 0x11d   : > { %v534_v3 = vpop.f32.mrb[0].mxu0 }
 0x11e   : > { %v536_v4 = vpop.f32.mrb[1].mxu0 }
 0x11f   : > { %v537_v5 = vpop.f32.mrb[2].mxu0  ;;  %v574_v6 = vpop.f32.mrb[0].mxu1 }
 0x120   : > { %v575_v7 = vadd.f32 %v574_v6, %v534_v3  ;;  %v538_v8 = vpop.f32.mrb[3].mxu0  ;;  %v576_v9 = vpop.f32.mrb[1].mxu1  ;;  %1539 = vmatmul.mubr.msk.f32.vlgmr.msra.gmra.mrb[0].mxu1 (!%p1489_p7), %vm855_vm6, %v1992_v52  ;;  %v842_v3 = vmul.f32 (!%p1489_p7), %v841_v63, %v836_v1 }
 0x121   : > { %v577_v10 = vpop.f32.mrb[2].mxu1  ;;  %1587 = vmatpush3.bf16.msra.mxu1 (!%p1489_p7), %v1586_v53  ;;  %1545 = vmatprep.mubr.msk.f32.mxu1 (!%p1489_p7), %vm1793_vm5, %v1794_v50  ;;  %v1008_v8 = vsub.s32 (!%p1489_p7), 7, %v1943_v14  ;;  %v1498_v14 = vld [vmem:[%s2130_s4 + $0x28] sm:$0xff] (!%p1489_p7) }
 0x122   : > { %v578_v11 = vpop.f32.mrb[3].mxu1  ;;  %1594 = vmatprep.subr.bf16.mxu1 (!%p1489_p7), %v1791_v47  ;;  %v847_v4 = vadd.f32 (!%p1489_p7), %v846_v2, %v842_v3 }
 0x123   : > { %v1009_v11 = vrot.slane (!%p1489_p7), %v832_v46, %v1008_v8 }
 0x124   : > { %v1490_v5 = vmul.f32 (!%p1489_p7), -1.442695, %v847_v4 }
 0x125   : > { %v614_v12 = vpop.f32.mrb[4].mxu0 }
 0x126   : > { %v615_v13 = vadd.f32 %v614_v12, %v575_v7  ;;  %v616_v15 = vpop.f32.mrb[5].mxu0  ;;  %1673 = vpow2.f32 (!%p1489_p7), %v1490_v5 }
 0x127   : > { %v617_v16 = vpop.f32.mrb[6].mxu0  ;;  %v654_v17 = vpop.f32.mrb[4].mxu1 }
 0x128   : > { %v655_v18 = vadd.f32 %v654_v17, %v615_v13  ;;  %v618_v19 = vpop.f32.mrb[7].mxu0  ;;  %v656_v20 = vpop.f32.mrb[5].mxu1 }
 0x129   : > { %v657_v21 = vpop.f32.mrb[6].mxu1 }
 0x12a   : > { %v658_v22 = vpop.f32.mrb[7].mxu1 }
 0x12d   : > { %v694_v23 = vpop.f32.mrb[8].mxu0 }
 0x12e   : > { %v695_v24 = vadd.f32 %v694_v23, %v655_v18  ;;  %v696_v25 = vpop.f32.mrb[9].mxu0 }
 0x12f   : > { %v697_v26 = vpop.f32.mrb[10].mxu0  ;;  %v734_v27 = vpop.f32.mrb[8].mxu1  ;;  %v1499_v25 = vld [vmem:[%s2130_s4 + $0x30] sm:$0xff] (!%p1489_p7) }
 0x130   : > { %v735_v28 = vadd.f32 %v734_v27, %v695_v24  ;;  %v698_v29 = vpop.f32.mrb[11].mxu0  ;;  %v736_v30 = vpop.f32.mrb[9].mxu1  ;;  %v1595_v26 = vpack.c.bf16 (!%p1489_p7), %v1499_v25, %v1498_v14  ;;  %v1500_v27 = vld [vmem:[%s2130_s4 + $0x38] sm:$0xff] (!%p1489_p7) }
 0x131   : > { %v737_v31 = vpop.f32.mrb[10].mxu1  ;;  %v1674_v6 = vpop.eup (!%p1489_p7), %1673  ;;  %v1495_v30 = vld [vmem:[%s2130_s4 + $0x20] ss:$0 sm:$0xff] (!%p1489_p7) }
 0x132   : > { %v738_v32 = vpop.f32.mrb[11].mxu1  ;;  %v851_v7 = vadd.f32 (!%p1489_p7), 1.0, %v1674_v6 }
 0x134   : > { %1675 = vrcp.f32 (!%p1489_p7), %v851_v7 }
 0x135   : > { %v774_v33 = vpop.f32.mrb[12].mxu0 }
 0x136   : > { %v775_v34 = vadd.f32 %v774_v33, %v735_v28  ;;  %v776_v35 = vpop.f32.mrb[13].mxu0  ;;  %826 = sbr.rel (%p1489_p7) target bundleno = 1636 (0x664), region = 56  ;;  %v1501_v28 = vld [vmem:[%s2130_s4 + $0x40] sm:$0xff] (!%p1489_p7) }
 0x137   : > { %v777_v36 = vpop.f32.mrb[14].mxu0  ;;  %v814_v38 = vpop.f32.mrb[12].mxu1  ;;  %v1598_v29 = vpack.c.bf16 (!%p1489_p7), %v1501_v28, %v1500_v27 }
 0x138   : > { %v815_v39 = vadd.f32 %v814_v38, %v775_v34  ;;  %v778_v40 = vpop.f32.mrb[15].mxu0  ;;  %v816_v41 = vpop.f32.mrb[13].mxu1 }
 0x139   : > { %v817_v42 = vpop.f32.mrb[14].mxu1  ;;  %v1200_v40 = vld [vmem:[%s2131_s5 + $0x8] sm:$0xff] (!%p1489_p7) }
 0x13a   : > { %v820_v43 = vadd.f32 %v815_v39, %v285_v37  ;;  %v818_v44 = vpop.f32.mrb[15].mxu1  ;;  %v1199_v39 = vld [vmem:[%s2131_s5] sm:$0xff] (!%p1489_p7)  ;;  %v1201_v42 = vld [vmem:[%s2131_s5 + $0x10] sm:$0xff] (!%p1489_p7) }
 0x13b   : > { %v1601_v41 = vpack.c.bf16 (!%p1489_p7), %v1200_v40, %v1199_v39 }
 0x13c   : > { %822 = vst.msk [vmem:[#allocation2] sm:$0x3] %vm821_vm1, %v820_v43  ;;  %v1202_v43 = vld [vmem:[%s2131_s5 + $0x18] sm:$0xff] (!%p1489_p7)  ;;  %vm1393_vm1 = vcmask (!%p1489_p7), 72704  }
 0x13d   : > { %v1604_v44 = vpack.c.bf16 %v1202_v43, %v1201_v42 }
 0x13e   : > { %v1676_v12 = vpop.eup %1675 }
 0x13f   : > { %v854_v17 = vmul.f32 %v1676_v12, %v847_v4 }
 0x143   : > { %v827_v55 = vld [vmem:[#allocation2] sm:$0x3] }
 0x144   : > { %1546 = vmatmul.mubr.msk.f32.vlgmr.msra.gmra.mrb[2].mxu1 %vm932_vm7, %v827_v55  ;;  %v1506_v55 = vld [vmem:[%s2131_s5 + $0x20] ss:$0 sm:$0xff] }
 0x145   : > { %1567 = vmatprep.mubr.msk.f32.mxu1 %vm1793_vm5, %v1794_v50  ;;  %1596 = vmatpush3.bf16.msra.mxu1 %v1595_v26 }
 0x146   : > { %1597 = vmatprep.subr.bf16.mxu1 %v1791_v47 }
 0x149   : > { %1599 = vmatpush3.bf16.msra.mxu1 %v1598_v29 }
 0x1f3   : > { %v928_v9 = vpop.f32.mrb[0].mxu1 }
 0x1f4   : > { %v1540_v10 = vpop.f32.mrb[1].mxu1 }
 0x217   : > { %v1002_v13 = vpop.f32.mrb[2].mxu1 }
 0x218   : > { %v1003_v15 = vadd.f32 %v1002_v13, %v928_v9  ;;  %v1547_v16 = vpop.f32.mrb[3].mxu1 }
 0x21a   : > { %v1010_v18 = vadd.f32 %v1009_v11, %v1003_v15 }
 0x21c   : > { %v1011_v19 = vadd.f32 %v1010_v18, %v854_v17 }
 0x21e   : > { %v1494_v20 = vmul.f32 -1.442695, %v1011_v19 }
 0x220   : > { %1677 = vpow2.f32 %v1494_v20 }
 0x22a   : > { %v1678_v21 = vpop.eup %1677 }
 0x22b   : > { %v1015_v22 = vadd.f32 1.0, %v1678_v21 }
 0x22d   : > { %1679 = vrcp.f32 %v1015_v22 }
 0x237   : > { %v1680_v23 = vpop.eup %1679 }
 0x238   : > { %v1018_v24 = vmul.f32 %v1680_v23, %v1011_v19 }
 0x23a   : > { %1557 = vmatmul.mubr.msk.f32.vlgmr.msra.gmra.mrb[0].mxu0 %vm1028_vm8, %v1018_v24 }
 0x23b   : > { %1578 = vmatprep.mubr.msk.f32.mxu0 %vm1793_vm5, %v1794_v50  ;;  %1602 = vmatpush3.bf16.msra.mxu0 %v1601_v41 }
 0x23c   : > { %1603 = vmatprep.subr.bf16.mxu0 %v1791_v47 }
 0x23f   : > { %1605 = vmatpush3.bf16.msra.mxu0 %v1604_v44 }
 0x30d   : > { %v1098_v31 = vpop.f32.mrb[0].mxu0 }
 0x30e   : > { %v1099_v32 = vadd.f32 %v1495_v30, %v1098_v31  ;;  %v1558_v33 = vpop.f32.mrb[1].mxu0 }
 0x310   : > { %v1497_v34 = vmul.f32 -1.442695, %v1099_v32 }
 0x312   : > { %1681 = vpow2.f32 %v1497_v34 }
 0x31c   : > { %v1682_v35 = vpop.eup %1681 }
 0x31d   : > { %v1105_v36 = vadd.f32 1.0, %v1682_v35 }
 0x31f   : > { %1683 = vrcp.f32 %v1105_v36 }
 0x329   : > { %v1684_v37 = vpop.eup %1683 }
 0x32a   : > { %v1108_v38 = vmul.f32 %v1684_v37, %v1099_v32 }
 0x32c   : > { %1568 = vmatmul.mubr.msk.f32.vlgmr.msra.gmra.mrb[4].mxu1 %vm1028_vm8, %v1108_v38 }
 0x3ff   : > { %v1188_v46 = vpop.f32.mrb[4].mxu1 }
 0x400   : > { %v1189_v48 = vadd.f32 %v1503_v45, %v1188_v46  ;;  %v1569_v49 = vpop.f32.mrb[5].mxu1 }
 0x402   : > { %v1505_v50 = vmul.f32 -1.442695, %v1189_v48 }
 0x404   : > { %1685 = vpow2.f32 %v1505_v50 }
 0x40e   : > { %v1686_v47 = vpop.eup %1685 }
 0x40f   : > { %v1195_v51 = vadd.f32 1.0, %v1686_v47 }
 0x411   : > { %1687 = vrcp.f32 %v1195_v51 }
 0x41b   : > { %v1688_v53 = vpop.eup %1687 }
 0x41c   : > { %v1198_v54 = vmul.f32 %v1688_v53, %v1189_v48 }
 0x41e   : > { %1579 = vmatmul.mubr.msk.f32.vlgmr.msra.gmra.mrb[2].mxu0 %vm1028_vm8, %v1198_v54 }
 0x4f1   : > { %v1277_v56 = vpop.f32.mrb[2].mxu0 }
 0x4f2   : > { %v2056_v57 = vadd.f32 %v1506_v55, %v1277_v56  ;;  %v1580_v58 = vpop.f32.mrb[3].mxu0 }
 0x4f4   : > { %1299 = vrot.lane.b32.xlu1 %v2056_v57, %s1796_s16  ;;  %1286 = vrot.lane.b32.xlu0 %v2056_v57, %s1797_s27 }
 0x4f8   : > { %1295 = vrot.lane.b32.xlu1 %v2056_v57, %s1798_s28  ;;  %1282 = vrot.lane.b32.xlu0 %v2056_v57, %s1799_s7 }
 0x4fc   : > { %1317 = vrot.lane.b32.xlu1 %v2056_v57, %s1800_s8  ;;  %1308 = vrot.lane.b32.xlu0 %v2056_v57, %s1801_s9 }
 0x500   : > { %1326 = vrot.lane.b32.xlu1 %v2056_v57, %s1802_s10  ;;  %1335 = vrot.lane.b32.xlu0 %v2056_v57, %s1803_s11 }
 0x566   : > { %v1300_v59 = vpop.permute.xlu1 %1299  ;;  %v1287_v60 = vpop.permute.xlu0 %1286 }
 0x567   : > { %v1302_v61 = vmul.f32 %v1300_v59, %v1992_v52  ;;  %v1289_v62 = vmul.f32 %v1287_v60, %v1992_v52 }
 0x569   : > { %1304 = vrot.lane.b32.xlu0 %v1302_v61, %s1799_s7  ;;  %1291 = vrot.lane.b32.xlu1 %v1289_v62, %s1798_s28 }
 0x56a   : > { %v1296_v63 = vpop.permute.xlu1 %1295  ;;  %v1283_v0 = vpop.permute.xlu0 %1282 }
 0x56b   : > { %v1298_v1 = vmul.f32 %v1296_v63, %v1992_v52  ;;  %v1285_v2 = vmul.f32 %v1283_v0, %v1992_v52 }
 0x56d   : > { %1313 = vrot.lane.b32.xlu1 %v1298_v1, %s1798_s28  ;;  %1322 = vrot.lane.b32.xlu0 %v1285_v2, %s1799_s7 }
 0x56e   : > { %v1318_v3 = vpop.permute.xlu1 %1317  ;;  %v1309_v4 = vpop.permute.xlu0 %1308 }
 0x56f   : > { %v1320_v5 = vmul.f32 %v1318_v3, %v1992_v52  ;;  %v1311_v6 = vmul.f32 %v1309_v4, %v1992_v52 }
 0x571   : > { %1331 = vrot.lane.b32.xlu1 %v1320_v5, %s1798_s28  ;;  %1340 = vrot.lane.b32.xlu0 %v1311_v6, %s1799_s7 }
 0x572   : > { %v1327_v7 = vpop.permute.xlu1 %1326  ;;  %v1336_v8 = vpop.permute.xlu0 %1335 }
 0x573   : > { %v1329_v20 = vmul.f32 %v1327_v7, %v1992_v52  ;;  %v1338_v21 = vmul.f32 %v1336_v8, %v1992_v52 }
 0x5db   : > { %v1292_v9 = vpop.permute.xlu1 %1291  ;;  %v1305_v10 = vpop.permute.xlu0 %1304 }
 0x5dc   : > { %v1294_v11 = vadd.f32 %v1292_v9, %v1285_v2  ;;  %v1307_v12 = vadd.f32 %v1305_v10, %v1298_v1 }
 0x5de   : > { %1345 = vrot.lane.b32.xlu1 %v1294_v11, %s1798_s28  ;;  %1349 = vrot.lane.b32.xlu0 %v1307_v12, %s1801_s9 }
 0x5df   : > { %v1314_v13 = vpop.permute.xlu1 %1313  ;;  %v1323_v15 = vpop.permute.xlu0 %1322 }
 0x5e0   : > { %v1316_v16 = vadd.f32 %v1314_v13, %v1311_v6  ;;  %v1325_v17 = vadd.f32 %v1323_v15, %v1320_v5 }
 0x5e2   : > { %1352 = vrot.lane.b32.xlu1 %v1294_v11, %s1800_s8  ;;  %1356 = vrot.lane.b32.xlu0 %v1316_v16, %s1798_s28 }
 0x5e3   : > { %v1332_v18 = vpop.permute.xlu1 %1331  ;;  %v1341_v19 = vpop.permute.xlu0 %1340 }
 0x5e4   : > { %v1334_v22 = vadd.f32 %v1332_v18, %v1329_v20  ;;  %v1343_v23 = vadd.f32 %v1341_v19, %v1338_v21 }
 0x5e6   : > { %1363 = vrot.lane.b32.xlu0 %v1316_v16, %s1800_s8  ;;  %1360 = vrot.lane.b32.xlu1 %v1325_v17, %s1801_s9 }
 0x5ea   : > { %1367 = vrot.lane.b32.xlu1 %v1334_v22, %s1798_s28  ;;  %1371 = vrot.lane.b32.xlu0 %v1343_v23, %s1801_s9 }
 0x5ee   : > { %1374 = vrot.lane.b32.xlu1 %v1334_v22, %s1800_s8 }
 0x650   : > { %v1346_v24 = vpop.permute.xlu1 %1345  ;;  %v1350_v14 = vpop.permute.xlu0 %1349 }
 0x651   : > { %v1378_v25 = vsel %vm1377_vm9, %v1346_v24, %v1350_v14 }
 0x654   : > { %v1353_v26 = vpop.permute.xlu1 %1352  ;;  %v1357_v27 = vpop.permute.xlu0 %1356 }
 0x655   : > { %v1380_v52 = vsel %vm1379_vm10, %v1378_v25, %v1353_v26 }
 0x656   : > { %v1382_v28 = vsel %vm1381_vm11, %v1380_v52, %v1357_v27 }
 0x658   : > { %v1361_v29 = vpop.permute.xlu1 %1360  ;;  %v1364_v30 = vpop.permute.xlu0 %1363 }
 0x659   : > { %v1384_v31 = vsel %vm1383_vm12, %v1382_v28, %v1361_v29 }
 0x65a   : > { %v1386_v32 = vsel %vm1385_vm13, %v1384_v31, %v1364_v30 }
 0x65c   : > { %v1368_v33 = vpop.permute.xlu1 %1367  ;;  %v1372_v35 = vpop.permute.xlu0 %1371 }
 0x65d   : > { %v1388_v34 = vsel %vm1387_vm14, %v1386_v32, %v1368_v33 }
 0x65e   : > { %v1390_v36 = vsel %vm1389_vm15, %v1388_v34, %v1372_v35 }
 0x660   : > { %v1375_v37 = vpop.permute.xlu1 %1374 }
 0x661   : > { %v1392_v38 = vsel %vm1391_vm0, %v1390_v36, %v1375_v37 }
 0x662   : > { %v1394_v39 = vsel %vm1393_vm1, %v1392_v38, %v2056_v57 }
 0x663   : > { %1396 = vst.msk [vmem:[#allocation6] sm:$0x3] %vm1395_vm2, %v1394_v39 }
 0x664 PF: > { %p1617_p4 = scmp.eq.s32.totalorder %s1859_s25, 1  ;;  %s1804_s13 = smov [#allocation6]  }
 0x665   : > { %s1404_s17 = sshll.u32 %s1804_s13, 4  ;;  %s1405_s17 = int_to_ptr.vmem [resolvable:$true] %s1404_s17 }
 0x666   : > { %s1719_s18 = scalar_lea.vmem %s1405_s17, 32  ;;  %p1726_p11 = scmp.lt.s32.totalorder %s1405_s17, %s1405_s17 }
 0x667   : > { %p1720_p5 = scmp.ne.s32.totalorder %s1405_s17, %s1719_s18  ;;  %p1727_p13 = scmp.lt.s32.totalorder %s1719_s18, %s1719_s18 }
 0x669   : > { %p1721_p6 = pnand %p1720_p5, %p1617_p4  ;;  %p1728_p0 = por %p1727_p13, %p1726_p11 }
 0x66b   : > { %p1722_p9 = pneg %p1721_p6 }
 0x66d   : > { %p1729_p1 = pnand %p1728_p0, %p1722_p9 }
 0x66f   : > { %1732 = shalt.err (!%p1729_p1)
}
 0x670   : > { %s1733_s21 = scalar_lea.hbm %s2132_s6, 32 }
 0x671   : > { %p1734_p10 = scmp.ne.s32.totalorder %s2132_s6, %s1733_s21  ;;  %p1739_p3 = scmp.lt.u32.totalorder %s1733_s21, %s2132_s6 }
 0x673   : > { %p1735_p12 = pnand %p1734_p10, %p1617_p4 }
 0x675   : > { %p1736_p2 = pneg %p1735_p12 }
 0x677   : > { %p1741_p8 = pnand %p1739_p3, %p1736_p2 }
 0x679   : > { %1744 = shalt.err (!%p1741_p8)
}
 0x67a   : > { %1609 = dma.vmem_to_hbm [thread:$0]  (%p1617_p4), %s1405_s17, 32, %s2132_s6, [#allocation5]  }
 0x67b   : > { %1766 = dma.done.wait (%p1617_p4), [#allocation5], 32  }
 0x67c   : > { %1768 = vsyncadd (%p1617_p4), [#allocation5], 4294967264 }
 0x67d PF: > { %p17_p7 = scmp.ge.s32.totalorder %s1862_s26, 4   ;;  %s2135_s21 = smov %s1775_s22 }
 0x67e   : > { %s2136_s22 = smov %s1779_s23  ;;  %s2137_s23 = smov %s1872_s29 }
 0x67f   : > { %s2138_s24 = smov %s1862_s26  ;;  %19 = sbr.rel (!%p17_p7) target bundleno = 4 (0x4), region = 93 }
 0x686   :  { %1417 = vsyncpa [#allocation4], 1 }
 0x687   :  { %1419 = vsyncpa [#allocation4 + $0x1], 1 }
 0x688   :  { %1420 = vsyncpa [#allocation5], 1 }
 0x689   :  { %1422 = vsyncpa [#allocation5 + $0x1], 1 }

</bundles_post_ra>
